<compile_context>
chip_gen: v7x
topology: tpu7x:2x2x1
jax: 0.10.0
libtpu: 0.0.40
codegen_flags: <defaults>
</compile_context>

<pallas_src>
import jax
import jax.numpy as jnp
from jax import lax
from jax.experimental import pallas as pl
from jax.experimental.pallas import tpu as pltpu

EPS = 1e-5
KERNEL_SIZES = (4, 3, 1)        # conv kernel sizes of the three residual blocks


def duration_predictor_kernel(x_ref,
                              w1_ref, sh1_ref,
                              w2_ref, sh2_ref,
                              w3_ref, sh3_ref,
                              w4_ref, b4_ref,
                              o_ref):
    tile_B, T, C = x_ref.shape
    R = tile_B * T
    # Fuse (batch, time) into one row axis; channels stay on lanes.  The
    # leading-dim merge is layout-free (C unchanged, T a multiple of 8 or full).
    h = x_ref[...].reshape(R, C).astype(jnp.float32)

    # Per-row time index within its own batch element, built once from a single
    # iota and shared across residual blocks (batch-boundary aware masks).
    tmod = lax.broadcasted_iota(jnp.int32, (tile_B, T, 1), 1).reshape(R, 1)
    mask_cache = {}

    def shifted(hh, d):
        """col[r] = hh[r + d] if row r+d lies in the same batch element and in
        [0, T); else 0 (the conv's zero padding).  d is a static python int."""
        if d == 0:
            return hh
        if d not in mask_cache:
            m = (tmod < (T - d)) if d > 0 else (tmod >= (-d))
            mask_cache[d] = m.astype(jnp.float32)
        return pltpu.roll(hh, shift=(-d) % R, axis=0) * mask_cache[d]

    def res_block(hh, w_ref, sh_ref, K):
        """hh + ReLU(conv_same_K(hh)) with conv bias + BN folded into w_ref/sh_ref."""
        pad_left = (K - 1) // 2      # 'same': (K-1)//2 left, K-1-(K-1)//2 right
        if K == 1:
            xcat = hh                                        # (R, C)
        else:
            # im2col: one lane-concat + one deep MXU matmul instead of K shallow ones.
            xcat = jnp.concatenate(
                [shifted(hh, k - pad_left) for k in range(K)], axis=-1)  # (R, K*C)
        # bf16 operands on the MXU, f32 accumulation; VPU math stays f32.
        y = jnp.dot(xcat.astype(jnp.bfloat16), w_ref[...],
                    preferred_element_type=jnp.float32)
        y = jnp.maximum(y + sh_ref[...], 0.0)                # fused bias+BN, ReLU
        return hh + y                                        # residual

    h = res_block(h, w1_ref, sh1_ref, KERNEL_SIZES[0])       # K = 4
    h = res_block(h, w2_ref, sh2_ref, KERNEL_SIZES[1])       # K = 3
    h = res_block(h, w3_ref, sh3_ref, KERNEL_SIZES[2])       # K = 1

    # Final 1-channel projection produced directly as a lane-dense (1, R) row
    # via an NT matmul (contract last dims) - no explicit h.T through the XLU.
    out_row = lax.dot_general(
        w4_ref[...], h.astype(jnp.bfloat16),
        dimension_numbers=(((1,), (1,)), ((), ())),
        preferred_element_type=jnp.float32) + b4_ref[...]    # (1, R)
    o_ref[0] = out_row.astype(o_ref.dtype)


def duration_predictor(x, fused_params, *, target_rows=256):
    """x: (B, T, C) float32 -> (B, T, 1) log-durations."""
    B, T, C = x.shape

    # Fold several batch elements into one grid step so tiny shapes don't pay
    # the ~0.35us/step fixed overhead per batch element; for long sequences this
    # degenerates to one batch element per ("parallel") step.
    tile_B = max(1, min(B, target_rows // max(T, 1)))
    while B % tile_B:
        tile_B -= 1
    num_tiles = B // tile_B
    R = tile_B * T

    def resident(a):   # full block, constant index -> weights stay resident in VMEM
        nd = a.ndim
        return pl.BlockSpec(a.shape, lambda i, _n=nd: (0,) * _n)

    in_specs = [pl.BlockSpec((tile_B, T, C), lambda i: (i, 0, 0))] + \
               [resident(p) for p in fused_params]
    # Lane-dense output slab (tile_B*T on the lane axis); reshaped to (B, T, 1) below.
    out_specs = pl.BlockSpec((1, 1, R), lambda i: (i, 0, 0))

    out = pl.pallas_call(
        duration_predictor_kernel,
        out_shape=jax.ShapeDtypeStruct((num_tiles, 1, R), x.dtype),
        grid_spec=pltpu.PrefetchScalarGridSpec(
            num_scalar_prefetch=0,
            grid=(num_tiles,),
            in_specs=in_specs,
            out_specs=out_specs),
        compiler_params=pltpu.CompilerParams(dimension_semantics=("parallel",)),
    )(x, *fused_params)
    # (num_tiles, 1, tile_B*T) rows are already in global (b, t) order.
    return out.reshape(B, T, 1)


def prepare_params(params):
    """Fold conv bias + inference-BN scale/shift into im2col weights (host-side).

    Weights are emitted in bf16 (MXU-native); per-channel shifts stay f32."""
    (w1, b1, s1, t1, w2, b2, s2, t2, w3, b3, s3, t3, w4, b4) = params

    def fuse(w, b, s, t):
        K, cin, cout = w.shape
        w_fused = (w * s.reshape(1, 1, cout)).reshape(K * cin, cout)  # (K*C, C)
        shift = b * s + t                                             # (1, C)
        return w_fused.astype(jnp.bfloat16), shift.astype(jnp.float32)

    w1f, sh1 = fuse(w1, b1, s1, t1)
    w2f, sh2 = fuse(w2, b2, s2, t2)
    w3f, sh3 = fuse(w3, b3, s3, t3)
    w4r = jnp.transpose(w4).astype(jnp.bfloat16)                      # (1, C)
    return (w1f, sh1, w2f, sh2, w3f, sh3, w4r, b4.astype(jnp.float32))


def init_params(key, C):
    """Deterministic synthetic parameters (no checkpoint)."""
    keys = jax.random.split(key, 20)
    it = iter(keys)

    def conv_params(K, cin, cout):
        scale = 0.3 / jnp.sqrt(jnp.float32(K * cin))
        w = scale * jax.random.normal(next(it), (K, cin, cout), jnp.float32)
        b = 0.1 * jax.random.normal(next(it), (1, cout), jnp.float32)
        return w, b

    def bn_params(cout):
        gamma = 1.0 + 0.1 * jax.random.normal(next(it), (1, cout), jnp.float32)
        beta = 0.1 * jax.random.normal(next(it), (1, cout), jnp.float32)
        mean = 0.1 * jax.random.normal(next(it), (1, cout), jnp.float32)
        var = 1.0 + 0.1 * jnp.abs(jax.random.normal(next(it), (1, cout), jnp.float32))
        scale = gamma / jnp.sqrt(var + EPS)   # fused inference-mode BatchNorm1d
        shift = beta - mean * scale
        return scale, shift

    w1, b1 = conv_params(4, C, C); s1, t1 = bn_params(C)
    w2, b2 = conv_params(3, C, C); s2, t2 = bn_params(C)
    w3, b3 = conv_params(1, C, C); s3, t3 = bn_params(C)
    w4 = (0.3 / jnp.sqrt(jnp.float32(C))) * jax.random.normal(next(it), (C, 1), jnp.float32)
    b4 = 0.1 * jax.random.normal(next(it), (1, 1), jnp.float32)

    return (w1, b1, s1, t1, w2, b2, s2, t2, w3, b3, s3, t3, w4, b4)


def reference_forward(x, params):
    """Pure-JAX f32 reference mirroring the assumed PyTorch semantics."""
    (w1, b1, s1, t1, w2, b2, s2, t2, w3, b3, s3, t3, w4, b4) = params

    def conv_same(h, w, b):
        K = w.shape[0]
        pad_left = (K - 1) // 2
        pad_right = K - 1 - pad_left
        x_nct = jnp.transpose(h, (0, 2, 1))          # (B, Cin, T)
        w_oik = jnp.transpose(w, (2, 1, 0))          # (Cout, Cin, K) = torch layout
        y = lax.conv_general_dilated(x_nct, w_oik, (1,), [(pad_left, pad_right)],
                                     dimension_numbers=("NCH", "OIH", "NCH"))
        return jnp.transpose(y, (0, 2, 1)) + b[None]

    def res_block(h, w, b, s, t):
        y = conv_same(h, w, b)
        y = y * s[None] + t[None]
        y = jnp.maximum(y, 0.0)
        return h + y

    h = res_block(x, w1, b1, s1, t1)
    h = res_block(h, w2, b2, s2, t2)
    h = res_block(h, w3, b3, s3, t3)
    return jnp.einsum("btc,co->bto", h, w4) + b4[None]


if __name__ == "__main__":
    B, T, C = 2, 16, 32           # small shapes: batch=2, seq=16, hp.channels=32
    key = jax.random.PRNGKey(0)
    kx, kp = jax.random.split(key)
    x = jax.random.normal(kx, (B, T, C), jnp.float32)
    params = init_params(kp, C)
    fused = prepare_params(params)

    out = duration_predictor(x, fused)
    out = jax.block_until_ready(out)
    assert out.shape == (B, T, 1), out.shape

    ref = reference_forward(x, params)
    err = float(jnp.max(jnp.abs(out - ref)))
    # Tolerance accounts for bf16 MXU operands (f32 accumulation) on O(1)
    # activations through three residual blocks + the final projection.
    if err > 3e-2:
        raise AssertionError(f"Pallas kernel mismatch vs reference, max abs err = {err}")

    print("KERNEL_OK")
</pallas_src>

<mosaic_0001>
module attributes {stable_mosaic.version = 11 : i64} {
  func.func @duration_predictor_kernel(%arg0: i32, %arg1: memref<2x16x32xf32, #tpu.memory_space<vmem>>, %arg2: memref<128x32xbf16, #tpu.memory_space<vmem>>, %arg3: memref<1x32xf32, #tpu.memory_space<vmem>>, %arg4: memref<96x32xbf16, #tpu.memory_space<vmem>>, %arg5: memref<1x32xf32, #tpu.memory_space<vmem>>, %arg6: memref<32x32xbf16, #tpu.memory_space<vmem>>, %arg7: memref<1x32xf32, #tpu.memory_space<vmem>>, %arg8: memref<1x32xbf16, #tpu.memory_space<vmem>>, %arg9: memref<1x1xf32, #tpu.memory_space<vmem>>, %arg10: memref<1x1x32xf32, #tpu.memory_space<vmem>>) attributes {dimension_semantics = [#tpu.dimension_semantics<parallel>], iteration_bounds = array<i64: 1>, scalar_prefetch = 0 : i64, scratch_operands = 0 : i64, tpu.core_type = #tpu.core_type<tc>, window_params = [{transform_indices = @transform_0, window_bounds = array<i64: 2, 16, 32>}, {pipeline_mode = #tpu.pipeline_mode<synchronous>, transform_indices = @transform_1, window_bounds = array<i64: 128, 32>}, {pipeline_mode = #tpu.pipeline_mode<synchronous>, transform_indices = @transform_2, window_bounds = array<i64: 1, 32>}, {pipeline_mode = #tpu.pipeline_mode<synchronous>, transform_indices = @transform_3, window_bounds = array<i64: 96, 32>}, {pipeline_mode = #tpu.pipeline_mode<synchronous>, transform_indices = @transform_4, window_bounds = array<i64: 1, 32>}, {pipeline_mode = #tpu.pipeline_mode<synchronous>, transform_indices = @transform_5, window_bounds = array<i64: 32, 32>}, {pipeline_mode = #tpu.pipeline_mode<synchronous>, transform_indices = @transform_6, window_bounds = array<i64: 1, 32>}, {pipeline_mode = #tpu.pipeline_mode<synchronous>, transform_indices = @transform_7, window_bounds = array<i64: 1, 32>}, {pipeline_mode = #tpu.pipeline_mode<synchronous>, transform_indices = @transform_8, window_bounds = array<i64: 1, 1>}, {transform_indices = @transform_9, window_bounds = array<i64: 1, 1, 32>}]} {
    %c0 = arith.constant 0 : index
    %c0_0 = arith.constant 0 : index
    %c0_1 = arith.constant 0 : index
    %0 = vector.load %arg1[%c0, %c0_0, %c0_1] : memref<2x16x32xf32, #tpu.memory_space<vmem>>, vector<2x16x32xf32>
    %1 = vector.shape_cast %0 : vector<2x16x32xf32> to vector<32x32xf32>
    %2 = tpu.iota {dimensions = array<i32: 1>} : vector<2x16x1xi32>
    %3 = vector.shape_cast %2 : vector<2x16x1xi32> to vector<32x1xi32>
    %c1_i32 = arith.constant 1 : i32
    %4 = vector.broadcast %c1_i32 : i32 to vector<32x1xi32>
    %5 = arith.cmpi sge, %3, %4 : vector<32x1xi32>
    %6 = arith.extui %5 : vector<32x1xi1> to vector<32x1xi32>
    %7 = arith.sitofp %6 : vector<32x1xi32> to vector<32x1xf32>
    %c1_i32_2 = arith.constant 1 : i32
    %8 = tpu.dynamic_rotate %1 by %c1_i32_2 dim 0 : vector<32x32xf32>, i32 -> vector<32x32xf32>
    %9 = vector.broadcast %7 : vector<32x1xf32> to vector<32x32xf32>
    %10 = arith.mulf %8, %9 : vector<32x32xf32>
    %c15_i32 = arith.constant 15 : i32
    %11 = vector.broadcast %c15_i32 : i32 to vector<32x1xi32>
    %12 = arith.cmpi slt, %3, %11 : vector<32x1xi32>
    %13 = arith.extui %12 : vector<32x1xi1> to vector<32x1xi32>
    %14 = arith.sitofp %13 : vector<32x1xi32> to vector<32x1xf32>
    %c31_i32 = arith.constant 31 : i32
    %15 = tpu.dynamic_rotate %1 by %c31_i32 dim 0 : vector<32x32xf32>, i32 -> vector<32x32xf32>
    %16 = vector.broadcast %14 : vector<32x1xf32> to vector<32x32xf32>
    %17 = arith.mulf %15, %16 : vector<32x32xf32>
    %c14_i32 = arith.constant 14 : i32
    %18 = vector.broadcast %c14_i32 : i32 to vector<32x1xi32>
    %19 = arith.cmpi slt, %3, %18 : vector<32x1xi32>
    %20 = arith.extui %19 : vector<32x1xi1> to vector<32x1xi32>
    %21 = arith.sitofp %20 : vector<32x1xi32> to vector<32x1xf32>
    %c30_i32 = arith.constant 30 : i32
    %22 = tpu.dynamic_rotate %1 by %c30_i32 dim 0 : vector<32x32xf32>, i32 -> vector<32x32xf32>
    %23 = vector.broadcast %21 : vector<32x1xf32> to vector<32x32xf32>
    %24 = arith.mulf %22, %23 : vector<32x32xf32>
    %25 = tpu.concatenate %10, %1, %17, %24 in 1 : vector<32x32xf32>, vector<32x32xf32>, vector<32x32xf32>, vector<32x32xf32> -> vector<32x128xf32>
    %26 = arith.truncf %25 : vector<32x128xf32> to vector<32x128xbf16>
    %c0_3 = arith.constant 0 : index
    %c0_4 = arith.constant 0 : index
    %27 = vector.load %arg2[%c0_3, %c0_4] : memref<128x32xbf16, #tpu.memory_space<vmem>>, vector<128x32xbf16>
    %cst = arith.constant dense<0.000000e+00> : vector<32x32xf32>
    %28 = tpu.matmul %26, %27, %cst {dimension_numbers = #tpu.dot_dimension_numbers<[1], [0], [0], [1], [0, 0, 1, 1], [], []>} : vector<32x128xbf16>, vector<128x32xbf16>, vector<32x32xf32> -> vector<32x32xf32>
    %c0_5 = arith.constant 0 : index
    %c0_6 = arith.constant 0 : index
    %29 = vector.load %arg3[%c0_5, %c0_6] : memref<1x32xf32, #tpu.memory_space<vmem>>, vector<1x32xf32>
    %30 = vector.broadcast %29 : vector<1x32xf32> to vector<32x32xf32>
    %31 = arith.addf %28, %30 : vector<32x32xf32>
    %cst_7 = arith.constant 0.000000e+00 : f32
    %32 = vector.broadcast %cst_7 : f32 to vector<32x32xf32>
    %33 = arith.maximumf %31, %32 : vector<32x32xf32>
    %34 = arith.addf %1, %33 : vector<32x32xf32>
    %c1_i32_8 = arith.constant 1 : i32
    %35 = tpu.dynamic_rotate %34 by %c1_i32_8 dim 0 : vector<32x32xf32>, i32 -> vector<32x32xf32>
    %36 = vector.broadcast %7 : vector<32x1xf32> to vector<32x32xf32>
    %37 = arith.mulf %35, %36 : vector<32x32xf32>
    %c31_i32_9 = arith.constant 31 : i32
    %38 = tpu.dynamic_rotate %34 by %c31_i32_9 dim 0 : vector<32x32xf32>, i32 -> vector<32x32xf32>
    %39 = vector.broadcast %14 : vector<32x1xf32> to vector<32x32xf32>
    %40 = arith.mulf %38, %39 : vector<32x32xf32>
    %41 = tpu.concatenate %37, %34, %40 in 1 : vector<32x32xf32>, vector<32x32xf32>, vector<32x32xf32> -> vector<32x96xf32>
    %42 = arith.truncf %41 : vector<32x96xf32> to vector<32x96xbf16>
    %c0_10 = arith.constant 0 : index
    %c0_11 = arith.constant 0 : index
    %43 = vector.load %arg4[%c0_10, %c0_11] : memref<96x32xbf16, #tpu.memory_space<vmem>>, vector<96x32xbf16>
    %cst_12 = arith.constant dense<0.000000e+00> : vector<32x32xf32>
    %44 = tpu.matmul %42, %43, %cst_12 {dimension_numbers = #tpu.dot_dimension_numbers<[1], [0], [0], [1], [0, 0, 1, 1], [], []>} : vector<32x96xbf16>, vector<96x32xbf16>, vector<32x32xf32> -> vector<32x32xf32>
    %c0_13 = arith.constant 0 : index
    %c0_14 = arith.constant 0 : index
    %45 = vector.load %arg5[%c0_13, %c0_14] : memref<1x32xf32, #tpu.memory_space<vmem>>, vector<1x32xf32>
    %46 = vector.broadcast %45 : vector<1x32xf32> to vector<32x32xf32>
    %47 = arith.addf %44, %46 : vector<32x32xf32>
    %cst_15 = arith.constant 0.000000e+00 : f32
    %48 = vector.broadcast %cst_15 : f32 to vector<32x32xf32>
    %49 = arith.maximumf %47, %48 : vector<32x32xf32>
    %50 = arith.addf %34, %49 : vector<32x32xf32>
    %51 = arith.truncf %50 : vector<32x32xf32> to vector<32x32xbf16>
    %c0_16 = arith.constant 0 : index
    %c0_17 = arith.constant 0 : index
    %52 = vector.load %arg6[%c0_16, %c0_17] : memref<32x32xbf16, #tpu.memory_space<vmem>>, vector<32x32xbf16>
    %cst_18 = arith.constant dense<0.000000e+00> : vector<32x32xf32>
    %53 = tpu.matmul %51, %52, %cst_18 {dimension_numbers = #tpu.dot_dimension_numbers<[1], [0], [0], [1], [0, 0, 1, 1], [], []>} : vector<32x32xbf16>, vector<32x32xbf16>, vector<32x32xf32> -> vector<32x32xf32>
    %c0_19 = arith.constant 0 : index
    %c0_20 = arith.constant 0 : index
    %54 = vector.load %arg7[%c0_19, %c0_20] : memref<1x32xf32, #tpu.memory_space<vmem>>, vector<1x32xf32>
    %55 = vector.broadcast %54 : vector<1x32xf32> to vector<32x32xf32>
    %56 = arith.addf %53, %55 : vector<32x32xf32>
    %cst_21 = arith.constant 0.000000e+00 : f32
    %57 = vector.broadcast %cst_21 : f32 to vector<32x32xf32>
    %58 = arith.maximumf %56, %57 : vector<32x32xf32>
    %59 = arith.addf %50, %58 : vector<32x32xf32>
    %c0_22 = arith.constant 0 : index
    %c0_23 = arith.constant 0 : index
    %60 = vector.load %arg8[%c0_22, %c0_23] : memref<1x32xbf16, #tpu.memory_space<vmem>>, vector<1x32xbf16>
    %61 = arith.truncf %59 : vector<32x32xf32> to vector<32x32xbf16>
    %cst_24 = arith.constant dense<0.000000e+00> : vector<1x32xf32>
    %62 = tpu.matmul %60, %61, %cst_24 {dimension_numbers = #tpu.dot_dimension_numbers<[1], [1], [0], [0], [0, 0, 1, 0], [], []>} : vector<1x32xbf16>, vector<32x32xbf16>, vector<1x32xf32> -> vector<1x32xf32>
    %c0_25 = arith.constant 0 : index
    %c0_26 = arith.constant 0 : index
    %63 = vector.load %arg9[%c0_25, %c0_26] : memref<1x1xf32, #tpu.memory_space<vmem>>, vector<1x1xf32>
    %64 = vector.broadcast %63 : vector<1x1xf32> to vector<1x32xf32>
    %65 = arith.addf %62, %64 : vector<1x32xf32>
    %c0_27 = arith.constant 0 : index
    %c0_28 = arith.constant 0 : index
    %c0_29 = arith.constant 0 : index
    %66 = vector.load %arg10[%c0_27, %c0_28, %c0_29] : memref<1x1x32xf32, #tpu.memory_space<vmem>>, vector<1x1x32xf32>
    %67 = vector.shape_cast %66 : vector<1x1x32xf32> to vector<1x32xf32>
    %68 = vector.shape_cast %65 : vector<1x32xf32> to vector<1x1x32xf32>
    tpu.vector_store %arg10[%c0_27, %c0_28, %c0_29], %68 {strides = array<i32>} : memref<1x1x32xf32, #tpu.memory_space<vmem>>, vector<1x1x32xf32>,
    return
  }
  func.func @transform_0(%arg0: i32) -> (i32, i32, i32) {
    %c0_i32 = arith.constant 0 : i32
    %c0_i32_0 = arith.constant 0 : i32
    %c0_i32_1 = arith.constant 0 : i32
    return %arg0, %c0_i32, %c0_i32_0 : i32, i32, i32
  }
  func.func @transform_1(%arg0: i32) -> (i32, i32) {
    %c0_i32 = arith.constant 0 : i32
    %c0_i32_0 = arith.constant 0 : i32
    %c0_i32_1 = arith.constant 0 : i32
    return %c0_i32, %c0_i32_0 : i32, i32
  }
  func.func @transform_2(%arg0: i32) -> (i32, i32) {
    %c0_i32 = arith.constant 0 : i32
    %c0_i32_0 = arith.constant 0 : i32
    %c0_i32_1 = arith.constant 0 : i32
    return %c0_i32, %c0_i32_0 : i32, i32
  }
  func.func @transform_3(%arg0: i32) -> (i32, i32) {
    %c0_i32 = arith.constant 0 : i32
    %c0_i32_0 = arith.constant 0 : i32
    %c0_i32_1 = arith.constant 0 : i32
    return %c0_i32, %c0_i32_0 : i32, i32
  }
  func.func @transform_4(%arg0: i32) -> (i32, i32) {
    %c0_i32 = arith.constant 0 : i32
    %c0_i32_0 = arith.constant 0 : i32
    %c0_i32_1 = arith.constant 0 : i32
    return %c0_i32, %c0_i32_0 : i32, i32
  }
  func.func @transform_5(%arg0: i32) -> (i32, i32) {
    %c0_i32 = arith.constant 0 : i32
    %c0_i32_0 = arith.constant 0 : i32
    %c0_i32_1 = arith.constant 0 : i32
    return %c0_i32, %c0_i32_0 : i32, i32
  }
  func.func @transform_6(%arg0: i32) -> (i32, i32) {
    %c0_i32 = arith.constant 0 : i32
    %c0_i32_0 = arith.constant 0 : i32
    %c0_i32_1 = arith.constant 0 : i32
    return %c0_i32, %c0_i32_0 : i32, i32
  }
  func.func @transform_7(%arg0: i32) -> (i32, i32) {
    %c0_i32 = arith.constant 0 : i32
    %c0_i32_0 = arith.constant 0 : i32
    %c0_i32_1 = arith.constant 0 : i32
    return %c0_i32, %c0_i32_0 : i32, i32
  }
  func.func @transform_8(%arg0: i32) -> (i32, i32) {
    %c0_i32 = arith.constant 0 : i32
    %c0_i32_0 = arith.constant 0 : i32
    %c0_i32_1 = arith.constant 0 : i32
    return %c0_i32, %c0_i32_0 : i32, i32
  }
  func.func @transform_9(%arg0: i32) -> (i32, i32, i32) {
    %c0_i32 = arith.constant 0 : i32
    %c0_i32_0 = arith.constant 0 : i32
    %c0_i32_1 = arith.constant 0 : i32
    return %arg0, %c0_i32, %c0_i32_0 : i32, i32, i32
  }
}

</mosaic_0001>

<bundles_post_ra>
// kernel: tpu_custom_call.1
= control target key start
LH: loop header
LB: loop body
LE: loop exit
PB: predicated region body
PF: predicated region fallthrough
CT: control target
= control target key end

     0   :  { %s1142_s0 = inlined_call_operand.vmem [shape: f32[2,16,32], index: 0, kind: input, shape index: {}]   ;;  %s1143_s1 = inlined_call_operand.vmem [shape: bf16[128,32], index: 1, kind: input, shape index: {}]   ;;  %s1144_s2 = inlined_call_operand.vmem [shape: f32[1,32], index: 2, kind: input, shape index: {}]   ;;  %s1145_s3 = inlined_call_operand.vmem [shape: bf16[96,32], index: 3, kind: input, shape index: {}]   ;;  %s1146_s4 = inlined_call_operand.vmem [shape: f32[1,32], index: 4, kind: input, shape index: {}]   ;;  %s1147_s5 = inlined_call_operand.vmem [shape: bf16[32,32], index: 5, kind: input, shape index: {}]   ;;  %s1148_s6 = inlined_call_operand.vmem [shape: f32[1,32], index: 6, kind: input, shape index: {}]   ;;  %s1149_s7 = inlined_call_operand.vmem [shape: bf16[1,32], index: 7, kind: input, shape index: {}]   ;;  %s1150_s8 = inlined_call_operand.<no memory space> [shape: f32[1,1], index: 8, kind: input, shape index: {}]   ;;  %s1151_s9 = inlined_call_operand.hbm [shape: f32[1,1,32], index: 9, kind: output, shape index: {}]  }
   0x1   :  { %v14_v0 = vstv %s1150_s8 }
   0x2   :  { %15 = vst [vmem:[#allocation2] sm:$0x1] %v14_v0 }
   0x3   :  { %v908_v1 = vld [vmem:[%s1142_s0] sm:$0xff]  ;;  %v913_v2 = vld [vmem:[%s1142_s0 + $0x8] sm:$0xff]  ;;  %v918_v3 = vld [vmem:[%s1142_s0 + $0x10] sm:$0xff]  ;;  %v40_v4 = vlaneseq  ;;  %s845_s21 = smov 32   ;;  %v846_v24 = vmov 0.0   ;;  %s847_s26 = smov 64  }
   0x4   :  { %v754_v5 = vpack.i.bf16 %v913_v2, %v908_v1  ;;  %v925_v6 = vld [vmem:[%s1142_s0 + $0x18] sm:$0xff]  ;;  %v68_v7 = vrot.slane %v908_v1, 1  ;;  %v69_v8 = vrot.slane %v913_v2, 1  ;;  %v805_v9 = vld [vmem:[%s1143_s1] sm:$0xff]   ;;  %v70_v12 = vrot.slane %v918_v3, 1  ;;  %v806_v14 = vld [vmem:[%s1143_s1 + $0x8] sm:$0xff]  }
   0x5   :  { %v759_v10 = vpack.i.bf16 %v925_v6, %v918_v3  ;;  %v934_v11 = vshrl.u32 %v40_v4, 7  ;;  %v87_v13 = vrot.slane %v908_v1, 2  ;;  %v88_v15 = vrot.slane %v913_v2, 2  ;;  %695 = vmatprep.subr.bf16.mxu0 %v805_v9  ;;  %v807_v20 = vld [vmem:[%s1143_s1 + $0x10] sm:$0xff]   ;;  %v808_v34 = vld [vmem:[%s1143_s1 + $0x18] sm:$0xff]   ;;  %s848_s27 = smov 96  }
   0x6   :  { %755 = vrot.lane.b32.xlu0 %v754_v5, %s845_s21  ;;  %v89_v16 = vrot.slane %v918_v3, 2  ;;  %v71_v17 = vrot.slane %v925_v6, 1  ;;  %v90_v18 = vrot.slane %v925_v6, 2  ;;  %696 = vmatpush3.bf16.msra.mxu0 %v805_v9  ;;  %v809_v39 = vld [vmem:[%s1143_s1 + $0x20] sm:$0xff]   ;;  %v810_v42 = vld [vmem:[%s1143_s1 + $0x28] sm:$0xff]  }
   0x7   :  { %v42_v19 = vadd.s32 8, %v934_v11  ;;  %vm72_vm0 = vcmp.lt.s32.totalorder %v934_v11, 7  ;;  %vm91_vm1 = vcmp.lt.s32.totalorder %v934_v11, 6  ;;  %697 = vmatprep.subr.bf16.mxu0 %v806_v14 }
   0x8   :  { %v74_v21 = vsel %vm72_vm0, %v69_v8, %v70_v12  ;;  %v93_v22 = vsel %vm91_vm1, %v88_v15, %v89_v16  ;;  %v76_v23 = vsel %vm72_vm0, %v71_v17, %v68_v7  ;;  %v75_v26 = vsel %vm72_vm0, %v68_v7, %v69_v8 }
   0x9   :  { %vm63_vm2 = vcmp.lt.s32.totalorder %v42_v19, 15  ;;  %vm82_vm3 = vcmp.lt.s32.totalorder %v42_v19, 14  ;;  %v94_v28 = vsel %vm91_vm1, %v87_v13, %v88_v15  ;;  %v73_v32 = vsel %vm72_vm0, %v70_v12, %v71_v17 }
   0xa   :  { %760 = vrot.lane.b32.xlu0 %v759_v10, %s845_s21  ;;  %v960_v25 = vsel %vm63_vm2, 1.0, %v846_v24  ;;  %v645_v27 = vsel %vm82_vm3, 1.0, %v846_v24  ;;  %698 = vmatpush3.bf16.msra.mxu0 %v806_v14  ;;  %v95_v33 = vsel %vm91_vm1, %v90_v18, %v87_v13  ;;  %v92_v40 = vsel %vm91_vm1, %v89_v16, %v90_v18 }
   0xb   :  { %v78_v29 = vmul.f32 %v960_v25, %v74_v21  ;;  %v97_v30 = vmul.f32 %v645_v27, %v93_v22  ;;  %v80_v31 = vmul.f32 %v960_v25, %v76_v23  ;;  %699 = vmatprep.subr.bf16.mxu0 %v807_v20  ;;  %v99_v38 = vmul.f32 %v645_v27, %v95_v33 }
   0xd   :  { %v764_v35 = vpack.i.bf16 %v78_v29, %v75_v26  ;;  %v774_v36 = vpack.i.bf16 %v97_v30, %v94_v28  ;;  %v769_v37 = vpack.i.bf16 %v80_v31, %v73_v32  ;;  %v779_v41 = vpack.i.bf16 %v99_v38, %v92_v40 }
   0xe   :  { %700 = vmatpush3.bf16.msra.mxu0 %v807_v20 }
   0xf   :  { %765 = vrot.lane.b32.xlu1 %v764_v35, %s847_s26  ;;  %775 = vrot.lane.b32.xlu0 %v774_v36, %s848_s27 }
  0x10   :  { %701 = vmatprep.subr.bf16.mxu0 %v808_v34 }
  0x12   :  { %702 = vmatpush3.bf16.msra.mxu0 %v808_v34 }
  0x13   :  { %770 = vrot.lane.b32.xlu1 %v769_v37, %s847_s26  ;;  %703 = vmatprep.subr.bf16.mxu0 %v809_v39 }
  0x14   :  { %16 = vsyncpa [#allocation4], 0  ;;  %v811_v43 = vld [vmem:[%s1143_s1 + $0x30] sm:$0xff]   ;;  %v812_v44 = vld [vmem:[%s1143_s1 + $0x38] sm:$0xff]   ;;  %v52_v45 = vrot.slane %v925_v6, 7  ;;  %v49_v46 = vrot.slane %v908_v1, 7 }
  0x15   :  { %vm43_vm4 = vcmp.ge.s32.totalorder %v934_v11, 1  ;;  %vm53_vm5 = vcmp.lt.s32.totalorder %v934_v11, 1  ;;  %v50_v48 = vrot.slane %v913_v2, 7  ;;  %v51_v51 = vrot.slane %v918_v3, 7  ;;  %v813_v31 = vld [vmem:[%s1145_s3] sm:$0xff]   ;;  %v814_v32 = vld [vmem:[%s1145_s3 + $0x8] sm:$0xff]  }
  0x16   :  { %704 = vmatpush3.bf16.msra.mxu0 %v809_v39  ;;  %v999_v49 = vsel %vm43_vm4, 1.0, %v846_v24  ;;  %v57_v50 = vsel %vm53_vm5, %v52_v45, %v49_v46  ;;  %vm148_vm6 = vcmask 261120   ;;  %vm153_vm7 = vcmask 523264   ;;  %715 = vmatprep.subr.bf16.mxu1 %v813_v31  ;;  %v815_v33 = vld [vmem:[%s1145_s3 + $0x10] sm:$0xff]   ;;  %v816_v34 = vld [vmem:[%s1145_s3 + $0x18] sm:$0xff]   ;;  %v817_v37 = vld [vmem:[%s1145_s3 + $0x20] sm:$0xff]  }
  0x17   :  { %780 = vrot.lane.b32.xlu1 %v779_v41, %s848_s27  ;;  %705 = vmatprep.subr.bf16.mxu0 %v810_v42  ;;  %v58_v55 = vmul.f32 %v999_v49, %v57_v50  ;;  %v56_v56 = vsel %vm53_vm5, %v49_v46, %v50_v48  ;;  %v55_v57 = vsel %vm53_vm5, %v50_v48, %v51_v51  ;;  %vm158_vm8 = vcmask 785408   ;;  %v646_v35 = vld [vmem:[%s1144_s2] ss:$0 sm:$0xff]  ;;  %s851_s10 = smov [#allocation3]  }
  0x18   :  { %v60_v5 = vmul.f32 %v999_v49, %v55_v57  ;;  %v54_v12 = vsel %vm53_vm5, %v51_v51, %v52_v45  ;;  %716 = vmatpush3.bf16.msra.mxu1 %v813_v31  ;;  %vm849_vm9 = vmmov 0   ;;  %s635_s11 = sshll.u32 %s851_s10, 4  ;;  %vm627_vm10 = vcmask 253952   ;;  %s636_s11 = int_to_ptr.vmem [resolvable:$true] %s635_s11 }
  0x19   :  { %717 = vmatprep.subr.bf16.mxu1 %v814_v32  ;;  %s821_s12 = scalar_lea.vmem %s636_s11, 16  ;;  %s825_s13 = scalar_lea.vmem %s636_s11, 32 }
  0x1a   :  { %706 = vmatpush3.bf16.msra.mxu0 %v810_v42  ;;  %p822_p0 = scmp.ne.s32.totalorder %s636_s11, %s821_s12  ;;  %p826_p1 = scmp.lt.s32.totalorder %s636_s11, %s636_s11 }
  0x1b   :  { %707 = vmatprep.subr.bf16.mxu0 %v811_v43  ;;  %p827_p2 = scmp.lt.s32.totalorder %s825_s13, %s821_s12 }
  0x1c   :  { %718 = vmatpush3.bf16.msra.mxu1 %v814_v32 }
  0x1d   :  { %719 = vmatprep.subr.bf16.mxu1 %v815_v33  ;;  %p828_p3 = por %p827_p2, %p826_p1 }
  0x1e   :  { %708 = vmatpush3.bf16.msra.mxu0 %v811_v43 }
  0x1f   :  { %709 = vmatprep.subr.bf16.mxu0 %v812_v44  ;;  %p829_p4 = pnand %p828_p3, %p822_p0 }
  0x20   :  { %720 = vmatpush3.bf16.msra.mxu1 %v815_v33 }
  0x21   :  { %721 = vmatprep.subr.bf16.mxu1 %v816_v34 }
  0x22   :  { %710 = vmatpush3.bf16.msra.mxu0 %v812_v44 }
  0x23   :  { %739 = vmatprep.subr.bf16.mxu0 %v846_v24 }
  0x24   :  { %722 = vmatpush3.bf16.msra.mxu1 %v816_v34 }
  0x25   :  { %723 = vmatprep.subr.bf16.mxu1 %v817_v37 }
  0x28   :  { %724 = vmatpush3.bf16.msra.mxu1 %v817_v37 }
  0x78   :  { %v756_v47 = vpop.permute.xlu0 %755 }
  0x79   :  { %v758_v53 = vunpack.i.h.bf16 %v756_v47  ;;  %v757_v54 = vunpack.i.l.bf16 %v756_v47  ;;  %v818_v47 = vld [vmem:[%s1145_s3 + $0x28] sm:$0xff]  }
  0x7a   :  { %725 = vmatprep.subr.bf16.mxu1 %v818_v47 }
  0x7b   :  { %v149_v60 = vsel %vm148_vm6, %v58_v55, %v757_v54  ;;  %v150_v61 = vsel %vm148_vm6, %v56_v56, %v758_v53  ;;  %726 = vmatpush3.bf16.msra.mxu1 %v818_v47 }
  0x7c   :  { %v761_v52 = vpop.permute.xlu0 %760 }
  0x7d   :  { %v763_v7 = vunpack.i.h.bf16 %v761_v52  ;;  %v762_v8 = vunpack.i.l.bf16 %v761_v52 }
  0x7f   :  { %v152_v19 = vsel %vm148_vm6, %v54_v12, %v763_v7  ;;  %v151_v20 = vsel %vm148_vm6, %v60_v5, %v762_v8 }
  0x81   :  { %v766_v58 = vpop.permute.xlu1 %765  ;;  %v776_v59 = vpop.permute.xlu0 %775 }
  0x82   :  { %v768_v62 = vunpack.i.h.bf16 %v766_v58  ;;  %v767_v63 = vunpack.i.l.bf16 %v766_v58  ;;  %v778_v0 = vunpack.i.h.bf16 %v776_v59  ;;  %v777_v4 = vunpack.i.l.bf16 %v776_v59 }
  0x84   :  { %v154_v9 = vsel %vm153_vm7, %v149_v60, %v767_v63  ;;  %v155_v10 = vsel %vm153_vm7, %v150_v61, %v768_v62 }
  0x85   :  { %v771_v13 = vpop.permute.xlu1 %770  ;;  %v159_v14 = vsel %vm158_vm8, %v154_v9, %v777_v4  ;;  %v160_v15 = vsel %vm158_vm8, %v155_v10, %v778_v0 }
  0x86   :  { %v163_v16 = vpack.c.bf16 %v160_v15, %v159_v14  ;;  %v773_v17 = vunpack.i.h.bf16 %v771_v13  ;;  %v772_v18 = vunpack.i.l.bf16 %v771_v13 }
  0x88   :  { %711 = vmatprep.mubr.bf16.mxu0 %v163_v16  ;;  %v157_v26 = vsel %vm153_vm7, %v152_v19, %v773_v17  ;;  %v156_v27 = vsel %vm153_vm7, %v151_v20, %v772_v18 }
  0x89   :  { %v781_v21 = vpop.permute.xlu1 %780 }
  0x8a   :  { %v783_v22 = vunpack.i.h.bf16 %v781_v21  ;;  %v782_v23 = vunpack.i.l.bf16 %v781_v21 }
  0x8c   :  { %v161_v28 = vsel %vm158_vm8, %v156_v27, %v782_v23  ;;  %v162_v29 = vsel %vm158_vm8, %v157_v26, %v783_v22 }
  0x8d   :  { %v164_v30 = vpack.c.bf16 %v162_v29, %v161_v28 }
  0x8f   :  { %712 = vmatmul.mubr.bf16.vlgmr.msra.gmra.mrb[0].mxu0 %v164_v30 }
  0x90   :  { %743 = vmatprep.mubr.msk.bf16.mxu0 %vm849_vm9, %v846_v24 }
 0x162   :  { %v713_v36 = vpop.f32.mrb[0].mxu0 }
 0x163   :  { %v279_v38 = vadd.f32 %v713_v36, %v646_v35  ;;  %v270_v39 = vpop.f32.mrb[1].mxu0 }
 0x164   :  { %v271_v40 = vadd.f32 %v646_v35, %v270_v39  ;;  %v714_v41 = vpop.f32.mrb[2].mxu0  ;;  %v820_v39 = vld [vmem:[%s1147_s5 + $0x8] sm:$0xff]  }
 0x165   :  { %v287_v42 = vmax.f32 %v279_v38, 0.0  ;;  %v282_v43 = vadd.f32 %v714_v41, %v646_v35  ;;  %v273_v44 = vpop.f32.mrb[3].mxu0  ;;  %v819_v38 = vld [vmem:[%s1147_s5] sm:$0xff]  }
 0x166   :  { %v285_v45 = vmax.f32 %v271_v40, 0.0  ;;  %v274_v46 = vadd.f32 %v646_v35, %v273_v44  ;;  %731 = vmatprep.subr.bf16.mxu1 %v819_v38  ;;  %v655_v40 = vld [vmem:[%s1146_s4] ss:$0 sm:$0xff] }
 0x167   :  { %v288_v48 = vmax.f32 %v282_v43, 0.0  ;;  %v1046_v50 = vadd.f32 %v287_v42, %v918_v3 }
 0x168   :  { %v1049_v51 = vadd.f32 %v285_v45, %v908_v1  ;;  %v286_v52 = vmax.f32 %v274_v46, 0.0 }
 0x169   :  { %v1052_v53 = vadd.f32 %v288_v48, %v925_v6  ;;  %v307_v57 = vrot.slane %v1046_v50, 1  ;;  %v295_v8 = vrot.slane %v1046_v50, 7 }
 0x16a   :  { %v305_v54 = vrot.slane %v1049_v51, 1  ;;  %v1056_v55 = vadd.f32 %v286_v52, %v913_v2  ;;  %v293_v5 = vrot.slane %v1049_v51, 7 }
 0x16b   :  { %v784_v56 = vpack.i.bf16 %v1052_v53, %v1046_v50  ;;  %v308_v3 = vrot.slane %v1052_v53, 1  ;;  %v296_v7 = vrot.slane %v1052_v53, 7 }
 0x16c   :  { %v789_v1 = vpack.i.bf16 %v1056_v55, %v1049_v51  ;;  %v306_v58 = vrot.slane %v1056_v55, 1  ;;  %v294_v4 = vrot.slane %v1056_v55, 7 }
 0x16d   :  { %785 = vrot.lane.b32.xlu1 %v784_v56, %s845_s21  ;;  %v312_v6 = vsel %vm72_vm0, %v308_v3, %v305_v54  ;;  %v309_v60 = vsel %vm72_vm0, %v307_v57, %v308_v3  ;;  %v300_v14 = vsel %vm53_vm5, %v296_v7, %v293_v5  ;;  %v297_v17 = vsel %vm53_vm5, %v295_v8, %v296_v7 }
 0x16e   :  { %790 = vrot.lane.b32.xlu0 %v789_v1, %s845_s21  ;;  %v316_v2 = vmul.f32 %v960_v25, %v312_v6  ;;  %v310_v59 = vsel %vm72_vm0, %v306_v58, %v307_v57  ;;  %v311_v63 = vsel %vm72_vm0, %v305_v54, %v306_v58  ;;  %v299_v23 = vsel %vm53_vm5, %v293_v5, %v294_v4 }
 0x16f   :  { %v314_v61 = vmul.f32 %v960_v25, %v310_v59  ;;  %v298_v25 = vsel %vm53_vm5, %v294_v4, %v295_v8  ;;  %v301_v26 = vmul.f32 %v999_v49, %v300_v14 }
 0x170   :  { %v799_v62 = vpack.i.bf16 %v316_v2, %v309_v60  ;;  %v303_v18 = vmul.f32 %v999_v49, %v298_v25  ;;  %v568_v60 = vld [vmem:[#allocation2] sm:$0x1] }
 0x171   :  { %v794_v0 = vpack.i.bf16 %v314_v61, %v311_v63  ;;  %v850_v61 = vmov 0  }
 0x172   :  { %800 = vrot.lane.b32.xlu1 %v799_v62, %s847_s26  ;;  %804 = vset.pattern.permute.xlu0 %v850_v61 }
 0x173   :  { %795 = vrot.lane.b32.xlu0 %v794_v0, %s847_s26 }
 0x177   :  { %571 = vperm.xlu0 %804, %v568_v60  }
 0x1df   :  { %v786_v9 = vpop.permute.xlu1 %785 }
 0x1e0   :  { %v791_v10 = vpop.permute.xlu0 %790  ;;  %v788_v12 = vunpack.i.h.bf16 %v786_v9  ;;  %v787_v13 = vunpack.i.l.bf16 %v786_v9 }
 0x1e1   :  { %v793_v15 = vunpack.i.h.bf16 %v791_v10  ;;  %v792_v16 = vunpack.i.l.bf16 %v791_v10 }
 0x1e2   :  { %v351_v27 = vsel %vm148_vm6, %v303_v18, %v787_v13  ;;  %v352_v28 = vsel %vm148_vm6, %v297_v17, %v788_v12 }
 0x1e3   :  { %v349_v33 = vsel %vm148_vm6, %v301_v26, %v792_v16  ;;  %v350_v34 = vsel %vm148_vm6, %v299_v23, %v793_v15 }
 0x1e4   :  { %v801_v19 = vpop.permute.xlu1 %800 }
 0x1e5   :  { %v803_v20 = vunpack.i.h.bf16 %v801_v19  ;;  %v802_v21 = vunpack.i.l.bf16 %v801_v19  ;;  %v796_v22 = vpop.permute.xlu0 %795  ;;  %v565_v19 = vld [vmem:[%s1149_s7] sm:$0x1] }
 0x1e6   :  { %v798_v29 = vunpack.i.h.bf16 %v796_v22  ;;  %v797_v30 = vunpack.i.l.bf16 %v796_v22 }
 0x1e7   :  { %v356_v31 = vsel %vm153_vm7, %v352_v28, %v803_v20  ;;  %v355_v32 = vsel %vm153_vm7, %v351_v27, %v802_v21  ;;  %v576_v20 = vsub.s32 0, %v934_v11 }
 0x1e8   :  { %v353_v35 = vsel %vm153_vm7, %v349_v33, %v797_v30  ;;  %v354_v36 = vsel %vm153_vm7, %v350_v34, %v798_v29  ;;  %v358_v49 = vpack.c.bf16 %v356_v31, %v355_v32 }
 0x1e9   :  { %v357_v37 = vpack.c.bf16 %v354_v36, %v353_v35 }
 0x1eb   :  { %727 = vmatprep.mubr.msk.bf16.mxu1 %vm158_vm8, %v357_v37 }
 0x1ec   :  { %728 = vmatmul.mubr.msk.bf16.vlgmr.msra.gmra.mrb[0].mxu1 %vm158_vm8, %v358_v49 }
 0x1ed   :  { %732 = vmatpush3.bf16.msra.mxu1 %v819_v38 }
 0x1ee   :  { %733 = vmatprep.subr.bf16.mxu1 %v820_v39 }
 0x1f1   :  { %734 = vmatpush3.bf16.msra.mxu1 %v820_v39 }
 0x1f6   :  { %v572_v21 = vpop.permute.xlu0 %571 }
 0x1f7   :  { %v577_v22 = vrot.slane %v572_v21, %v576_v20 }
 0x2bf   :  { %v729_v41 = vpop.f32.mrb[0].mxu1 }
 0x2c0   :  { %v463_v42 = vadd.f32 %v729_v41, %v655_v40  ;;  %v454_v43 = vpop.f32.mrb[1].mxu1 }
 0x2c1   :  { %v455_v44 = vadd.f32 %v655_v40, %v454_v43  ;;  %v730_v45 = vpop.f32.mrb[2].mxu1 }
 0x2c2   :  { %v466_v46 = vadd.f32 %v730_v45, %v655_v40  ;;  %v457_v47 = vpop.f32.mrb[3].mxu1  ;;  %v471_v54 = vmax.f32 %v463_v42, 0.0 }
 0x2c3   :  { %v469_v48 = vmax.f32 %v455_v44, 0.0  ;;  %v458_v52 = vadd.f32 %v655_v40, %v457_v47 }
 0x2c4   :  { %v472_v56 = vmax.f32 %v466_v46, 0.0  ;;  %v475_v6 = vadd.f32 %v471_v54, %v1046_v50 }
 0x2c5   :  { %v470_v3 = vmax.f32 %v458_v52, 0.0  ;;  %v473_v57 = vadd.f32 %v469_v48, %v1049_v51  ;;  %v664_v51 = vld [vmem:[%s1148_s6] ss:$0 sm:$0xff] }
 0x2c6   :  { %v476_v1 = vadd.f32 %v472_v56, %v1052_v53 }
 0x2c7   :  { %v474_v58 = vadd.f32 %v470_v3, %v1056_v55 }
 0x2c8   :  { %v478_v59 = vpack.c.bf16 %v476_v1, %v475_v6 }
 0x2c9   :  { %v477_v2 = vpack.c.bf16 %v474_v58, %v473_v57 }
 0x2cb   :  { %735 = vmatprep.mubr.msk.bf16.mxu1 %vm148_vm6, %v477_v2 }
 0x2cc   :  { %736 = vmatmul.mubr.msk.bf16.vlgmr.msra.gmra.mrb[4].mxu1 %vm148_vm6, %v478_v59 }
 0x39f   :  { %v737_v53 = vpop.f32.mrb[4].mxu1 }
 0x3a0   :  { %v551_v55 = vadd.f32 %v737_v53, %v664_v51  ;;  %v542_v50 = vpop.f32.mrb[5].mxu1 }
 0x3a1   :  { %v543_v62 = vadd.f32 %v664_v51, %v542_v50  ;;  %v738_v63 = vpop.f32.mrb[6].mxu1 }
 0x3a2   :  { %v559_v0 = vmax.f32 %v551_v55, 0.0  ;;  %v554_v4 = vadd.f32 %v738_v63, %v664_v51  ;;  %v545_v5 = vpop.f32.mrb[7].mxu1 }
 0x3a3   :  { %v557_v7 = vmax.f32 %v543_v62, 0.0  ;;  %v546_v8 = vadd.f32 %v664_v51, %v545_v5 }
 0x3a4   :  { %v560_v9 = vmax.f32 %v554_v4, 0.0  ;;  %v563_v25 = vadd.f32 %v559_v0, %v475_v6 }
 0x3a5   :  { %v558_v10 = vmax.f32 %v546_v8, 0.0  ;;  %v561_v13 = vadd.f32 %v557_v7, %v473_v57 }
 0x3a6   :  { %v564_v12 = vadd.f32 %v560_v9, %v476_v1 }
 0x3a7   :  { %v562_v14 = vadd.f32 %v558_v10, %v474_v58 }
 0x3a8   :  { %v567_v15 = vpack.c.bf16 %v564_v12, %v563_v25 }
 0x3a9   :  { %v566_v16 = vpack.c.bf16 %v562_v14, %v561_v13 }
 0x3aa   :  { %v585_v18 = vsel %vm148_vm6, %v567_v15, 0 }
 0x3ab   :  { %v582_v17 = vsel %vm148_vm6, %v566_v16, 0 }
 0x3ac   :  { %740 = vmatpush3.bf16.xpose.msra.mxu0 %v582_v17 }
 0x3ad   :  { %741 = vmatprep.subr.bf16.mxu0 %v846_v24 }
 0x3b4   :  { %742 = vmatpush3.bf16.xpose.msra.mxu0 %v585_v18 }
 0x3bb   :  { %744 = vmatmul.mubr.msk.bf16.vlgmr.msra.gmra.mrb[4].mxu0 %vm148_vm6, %v565_v19 }
 0x48e   :  { %v621_v23 = vpop.f32.mrb[4].mxu0 }
 0x48f   :  { %v622_v26 = vadd.f32 %v621_v23, %v577_v22  ;;  %v745_v27 = vpop.f32.mrb[5].mxu0 }
 0x490   :  { %v624_v24 = vpop.f32.mrb[6].mxu0 }
 0x491   :  { %v746_v28 = vpop.f32.mrb[7].mxu0  ;;  %628 = vst.msk [vmem:[#allocation3] sm:$0x1] %vm627_vm10, %v622_v26 }
 0x492   :  { %832 = shalt.err (!%p829_p4)
}
 0x493   :  { %s833_s1 = scalar_lea.hbm %s1151_s9, 16 }
 0x494   :  { %p834_p5 = scmp.ne.s32.totalorder %s1151_s9, %s833_s1  ;;  %p837_p6 = scmp.lt.u32.totalorder %s833_s1, %s1151_s9 }
 0x496   :  { %p839_p7 = pnand %p837_p6, %p834_p5 }
 0x498   :  { %842 = shalt.err (!%p839_p7)
}
 0x499   :  { %638 = dma.vmem_to_hbm [thread:$0]  %s636_s11, 16, %s1151_s9, [#allocation4]  }
 0x49a   :  { %843 = dma.done.wait [#allocation4], 16  }
 0x49b   :  { %844 = vsyncadd [#allocation4], 4294967280 }
 0x49c   :  { %642 = vsyncpa [#allocation4], 1 }

</bundles_post_ra>
